<compile_context>
chip_gen: v5e
topology: v5e:2x2
jax: 0.10.0
libtpu: 0.0.40
codegen_flags: <defaults>
</compile_context>

<pallas_src>
import jax
import jax.numpy as jnp
from jax.experimental import pallas as pl
from jax.experimental.pallas import tpu as pltpu


def _round_up(x: int, m: int) -> int:
    return ((x + m - 1) // m) * m


def _ff_ingr_decoder_kernel(x_ref, w1_ref, bn_scale_ref, bn_shift_ref,
                            wc_ref, bc_ref, logits_ref, h_ref):
    """One (batch-tile i, vocab-tile j) grid step.

    x_ref        : (TILE_N, S, E)   f32   seq on sublanes, embed on lanes
    w1_ref       : (E, H)           bf16  pooling 1/S pre-folded
    bn_scale_ref : (1, H)           f32   gamma / sqrt(var + eps)
    bn_shift_ref : (1, H)           f32   beta - mean * scale
    wc_ref       : (H, TILE_V)      bf16  classifier column tile
    bc_ref       : (1, TILE_V)      f32
    logits_ref   : (TILE_N, TILE_V) f32   output block
    h_ref        : (TILE_N, H)      f32   VMEM scratch, reused across vocab tiles
    """
    j = pl.program_id(1)

    @pl.when(j == 0)
    def _():
        # _average_pooling: sum over seq (the 1/S scale rides inside w1).
        feat = jnp.sum(x_ref[...], axis=1)                      # (TILE_N, E) f32
        h = jnp.dot(feat.astype(w1_ref.dtype), w1_ref[...],
                    preferred_element_type=jnp.float32)         # (TILE_N, H) f32
        h = h * bn_scale_ref[...] + bn_shift_ref[...]           # eval-mode BatchNorm1d
        h = jnp.maximum(h, 0.0)                                 # ReLU
        h_ref[...] = h

    logits = jnp.dot(h_ref[...].astype(wc_ref.dtype), wc_ref[...],
                     preferred_element_type=jnp.float32) + bc_ref[...]
    logits_ref[...] = logits


def prepare_params(params, seq_len, *, param_dtype=jnp.bfloat16, max_tile_v=1024):
    """One-time prep: transpose weights, fold BN + 1/S pooling, cast to bf16,
    pad classifier columns to a lane-dense multiple of 128."""
    eps = 1e-5
    inv_std = 1.0 / jnp.sqrt(params["bn_var"].astype(jnp.float32) + eps)
    scale = params["bn_gamma"].astype(jnp.float32) * inv_std
    bn_scale = scale[None, :]                                              # (1, H)
    bn_shift = (params["bn_beta"].astype(jnp.float32)
                - params["bn_mean"].astype(jnp.float32) * scale)[None, :]  # (1, H)

    w1_t = (params["w1"].T.astype(jnp.float32) / float(seq_len)).astype(param_dtype)  # (E, H)
    wc_t = params["wc"].T.astype(param_dtype)                                         # (H, V-1)
    bc = params["bc"].astype(jnp.float32)[None, :]                                    # (1, V-1)

    vocab_m1 = wc_t.shape[1]
    tile_v = max_tile_v if vocab_m1 > max_tile_v else _round_up(vocab_m1, 128)
    v_pad = _round_up(vocab_m1, tile_v)
    if v_pad != vocab_m1:
        wc_t = jnp.pad(wc_t, ((0, 0), (0, v_pad - vocab_m1)))
        bc = jnp.pad(bc, ((0, 0), (0, v_pad - vocab_m1)))

    return dict(w1_t=w1_t, wc_t=wc_t, bc=bc,
                bn_scale=bn_scale, bn_shift=bn_shift,
                vocab_m1=vocab_m1, tile_v=tile_v)


def ff_ingredient_decoder(img_features, prep, *, tile_n=64):
    """img_features: (N, embed_size, seq_len) float32 (PyTorch layout).
    Returns (logits[N, vocab_size-1], None)."""
    N, E, S = img_features.shape
    w1_t, wc_t = prep["w1_t"], prep["wc_t"]
    H = w1_t.shape[1]
    v_pad = wc_t.shape[1]
    tile_v = prep["tile_v"]
    vocab_m1 = prep["vocab_m1"]

    # Lane-dense layout: seq on sublanes, embed on the 128-wide lane axis.
    x = jnp.transpose(img_features, (0, 2, 1))                  # (N, S, E)

    # TODO(synk): on v7x (64 MiB VMEM) halve tile_n if blocks approach the scoped limit.
    tile_n = min(tile_n, _round_up(N, 8))
    n_pad = _round_up(N, tile_n)
    if n_pad != N:
        x = jnp.pad(x, ((0, n_pad - N), (0, 0), (0, 0)))

    grid = (n_pad // tile_n, v_pad // tile_v)

    logits = pl.pallas_call(
        _ff_ingr_decoder_kernel,
        out_shape=jax.ShapeDtypeStruct((n_pad, v_pad), jnp.float32),
        grid_spec=pltpu.PrefetchScalarGridSpec(
            num_scalar_prefetch=0,
            grid=grid,
            in_specs=[
                pl.BlockSpec((tile_n, S, E), lambda i, j: (i, 0, 0)),   # activations (streamed)
                pl.BlockSpec((E, H),        lambda i, j: (0, 0)),       # w1 (resident)
                pl.BlockSpec((1, H),        lambda i, j: (0, 0)),       # bn scale (resident)
                pl.BlockSpec((1, H),        lambda i, j: (0, 0)),       # bn shift (resident)
                pl.BlockSpec((H, tile_v),   lambda i, j: (0, j)),       # wc column tile
                pl.BlockSpec((1, tile_v),   lambda i, j: (0, j)),       # bc column tile
            ],
            out_specs=pl.BlockSpec((tile_n, tile_v), lambda i, j: (i, j)),
            scratch_shapes=[pltpu.VMEM((tile_n, H), jnp.float32)],      # cached hidden feat
        ),
        compiler_params=pltpu.CompilerParams(
            # Batch tiles are independent -> megacore-parallel on v7x.
            # Vocab axis must stay sequential: h scratch is filled at j == 0.
            dimension_semantics=("parallel", "arbitrary"),
        ),
    )(x, w1_t, prep["bn_scale"], prep["bn_shift"], wc_t, prep["bc"])

    # Slice off batch / vocab padding.  fc_cardinality is None by default.
    return logits[:N, :vocab_m1], None


def init_params(key, embed_size, hidden_size, vocab_size):
    k1, k2, k3, k4 = jax.random.split(key, 4)
    # PyTorch Linear weights are (out_features, in_features)
    w1 = jax.random.normal(k1, (hidden_size, embed_size), jnp.float32) * 0.05
    wc = jax.random.normal(k2, (vocab_size - 1, hidden_size), jnp.float32) * 0.05
    bc = jax.random.normal(k3, (vocab_size - 1,), jnp.float32) * 0.05
    # BatchNorm1d parameters / running stats (deterministic, non-trivial)
    bn_gamma = jnp.ones((hidden_size,), jnp.float32) * 1.1
    bn_beta = jnp.full((hidden_size,), 0.05, jnp.float32)
    bn_mean = jax.random.normal(k4, (hidden_size,), jnp.float32) * 0.01
    bn_var = jnp.ones((hidden_size,), jnp.float32) * 0.9
    return dict(w1=w1, wc=wc, bc=bc,
                bn_gamma=bn_gamma, bn_beta=bn_beta,
                bn_mean=bn_mean, bn_var=bn_var)


if __name__ == "__main__":
    # Small shapes: batch=2, embed_size=32, seq_len=8, hidden_size=32, vocab_size=20
    N, E, S, H, V = 2, 32, 8, 32, 20
    key = jax.random.PRNGKey(0)
    kx, kp = jax.random.split(key)
    img_features = jax.random.normal(kx, (N, E, S), jnp.float32)
    params = init_params(kp, embed_size=E, hidden_size=H, vocab_size=V)

    prep = prepare_params(params, seq_len=S)
    logits, card = ff_ingredient_decoder(img_features, prep)
    logits = jax.block_until_ready(logits)

    # Pure-JAX f32 reference (original module semantics).
    feat = jnp.mean(img_features, axis=-1)
    h = feat @ params["w1"].T
    inv_std = 1.0 / jnp.sqrt(params["bn_var"] + 1e-5)
    h = (h - params["bn_mean"]) * inv_std * params["bn_gamma"] + params["bn_beta"]
    h = jnp.maximum(h, 0.0)
    ref = h @ params["wc"].T + params["bc"]

    assert logits.shape == (N, V - 1), logits.shape
    assert card is None
    # Kernel uses bf16 weights with f32 accumulation -> allow tiny quantization error.
    max_err = float(jnp.max(jnp.abs(logits - ref)))
    assert max_err < 2e-2, f"max abs err {max_err}"

    print("KERNEL_OK")
</pallas_src>

<mosaic_0001>
module attributes {stable_mosaic.version = 11 : i64} {
  func.func @_ff_ingr_decoder_kernel(%arg0: i32, %arg1: i32, %arg2: memref<8x8x32xf32, #tpu.memory_space<vmem>>, %arg3: memref<32x32xbf16, #tpu.memory_space<vmem>>, %arg4: memref<1x32xf32, #tpu.memory_space<vmem>>, %arg5: memref<1x32xf32, #tpu.memory_space<vmem>>, %arg6: memref<32x128xbf16, #tpu.memory_space<vmem>>, %arg7: memref<1x128xf32, #tpu.memory_space<vmem>>, %arg8: memref<8x128xf32, #tpu.memory_space<vmem>>, %arg9: memref<8x32xf32, #tpu.memory_space<vmem>>) attributes {dimension_semantics = [#tpu.dimension_semantics<parallel>, #tpu.dimension_semantics<arbitrary>], iteration_bounds = array<i64: 1, 1>, scalar_prefetch = 0 : i64, scratch_operands = 1 : i64, tpu.core_type = #tpu.core_type<tc>, window_params = [{transform_indices = @transform_0, window_bounds = array<i64: 8, 8, 32>}, {pipeline_mode = #tpu.pipeline_mode<synchronous>, transform_indices = @transform_1, window_bounds = array<i64: 32, 32>}, {pipeline_mode = #tpu.pipeline_mode<synchronous>, transform_indices = @transform_2, window_bounds = array<i64: 1, 32>}, {pipeline_mode = #tpu.pipeline_mode<synchronous>, transform_indices = @transform_3, window_bounds = array<i64: 1, 32>}, {transform_indices = @transform_4, window_bounds = array<i64: 32, 128>}, {transform_indices = @transform_5, window_bounds = array<i64: 1, 128>}, {transform_indices = @transform_6, window_bounds = array<i64: 8, 128>}]} {
    %c0_i32 = arith.constant 0 : i32
    %0 = arith.cmpi eq, %arg1, %c0_i32 : i32
    %1 = arith.extui %0 : i1 to i32
    %c0_i32_0 = arith.constant 0 : i32
    %2 = arith.cmpi ne, %1, %c0_i32_0 : i32
    scf.if %2 {
      %c0_8 = arith.constant 0 : index
      %c0_9 = arith.constant 0 : index
      %c0_10 = arith.constant 0 : index
      %11 = vector.load %arg2[%c0_8, %c0_9, %c0_10] : memref<8x8x32xf32, #tpu.memory_space<vmem>>, vector<8x8x32xf32>
      %cst_11 = arith.constant dense<0.000000e+00> : vector<8x32xf32>
      %12 = vector.multi_reduction <add>, %11, %cst_11 [1] : vector<8x8x32xf32> to vector<8x32xf32>
      %13 = arith.truncf %12 : vector<8x32xf32> to vector<8x32xbf16>
      %c0_12 = arith.constant 0 : index
      %c0_13 = arith.constant 0 : index
      %14 = vector.load %arg3[%c0_12, %c0_13] : memref<32x32xbf16, #tpu.memory_space<vmem>>, vector<32x32xbf16>
      %cst_14 = arith.constant dense<0.000000e+00> : vector<8x32xf32>
      %15 = tpu.matmul %13, %14, %cst_14 {dimension_numbers = #tpu.dot_dimension_numbers<[1], [0], [0], [1], [0, 0, 1, 1], [], []>} : vector<8x32xbf16>, vector<32x32xbf16>, vector<8x32xf32> -> vector<8x32xf32>
      %c0_15 = arith.constant 0 : index
      %c0_16 = arith.constant 0 : index
      %16 = vector.load %arg4[%c0_15, %c0_16] : memref<1x32xf32, #tpu.memory_space<vmem>>, vector<1x32xf32>
      %17 = vector.broadcast %16 : vector<1x32xf32> to vector<8x32xf32>
      %18 = arith.mulf %15, %17 : vector<8x32xf32>
      %c0_17 = arith.constant 0 : index
      %c0_18 = arith.constant 0 : index
      %19 = vector.load %arg5[%c0_17, %c0_18] : memref<1x32xf32, #tpu.memory_space<vmem>>, vector<1x32xf32>
      %20 = vector.broadcast %19 : vector<1x32xf32> to vector<8x32xf32>
      %21 = arith.addf %18, %20 : vector<8x32xf32>
      %cst_19 = arith.constant 0.000000e+00 : f32
      %22 = vector.broadcast %cst_19 : f32 to vector<8x32xf32>
      %23 = arith.maximumf %21, %22 : vector<8x32xf32>
      %c0_20 = arith.constant 0 : index
      %c0_21 = arith.constant 0 : index
      %24 = vector.load %arg9[%c0_20, %c0_21] : memref<8x32xf32, #tpu.memory_space<vmem>>, vector<8x32xf32>
      tpu.vector_store %arg9[%c0_20, %c0_21], %23 {strides = array<i32>} : memref<8x32xf32, #tpu.memory_space<vmem>>, vector<8x32xf32>,
    } else {
    }
    %c0 = arith.constant 0 : index
    %c0_1 = arith.constant 0 : index
    %3 = vector.load %arg9[%c0, %c0_1] : memref<8x32xf32, #tpu.memory_space<vmem>>, vector<8x32xf32>
    %4 = arith.truncf %3 : vector<8x32xf32> to vector<8x32xbf16>
    %c0_2 = arith.constant 0 : index
    %c0_3 = arith.constant 0 : index
    %5 = vector.load %arg6[%c0_2, %c0_3] : memref<32x128xbf16, #tpu.memory_space<vmem>>, vector<32x128xbf16>
    %cst = arith.constant dense<0.000000e+00> : vector<8x128xf32>
    %6 = tpu.matmul %4, %5, %cst {dimension_numbers = #tpu.dot_dimension_numbers<[1], [0], [0], [1], [0, 0, 1, 1], [], []>} : vector<8x32xbf16>, vector<32x128xbf16>, vector<8x128xf32> -> vector<8x128xf32>
    %c0_4 = arith.constant 0 : index
    %c0_5 = arith.constant 0 : index
    %7 = vector.load %arg7[%c0_4, %c0_5] : memref<1x128xf32, #tpu.memory_space<vmem>>, vector<1x128xf32>
    %8 = vector.broadcast %7 : vector<1x128xf32> to vector<8x128xf32>
    %9 = arith.addf %6, %8 : vector<8x128xf32>
    %c0_6 = arith.constant 0 : index
    %c0_7 = arith.constant 0 : index
    %10 = vector.load %arg8[%c0_6, %c0_7] : memref<8x128xf32, #tpu.memory_space<vmem>>, vector<8x128xf32>
    tpu.vector_store %arg8[%c0_6, %c0_7], %9 {strides = array<i32>} : memref<8x128xf32, #tpu.memory_space<vmem>>, vector<8x128xf32>,
    return
  }
  func.func @transform_0(%arg0: i32, %arg1: i32) -> (i32, i32, i32) {
    %c0_i32 = arith.constant 0 : i32
    %c0_i32_0 = arith.constant 0 : i32
    %c0_i32_1 = arith.constant 0 : i32
    return %arg0, %c0_i32, %c0_i32_0 : i32, i32, i32
  }
  func.func @transform_1(%arg0: i32, %arg1: i32) -> (i32, i32) {
    %c0_i32 = arith.constant 0 : i32
    %c0_i32_0 = arith.constant 0 : i32
    %c0_i32_1 = arith.constant 0 : i32
    return %c0_i32, %c0_i32_0 : i32, i32
  }
  func.func @transform_2(%arg0: i32, %arg1: i32) -> (i32, i32) {
    %c0_i32 = arith.constant 0 : i32
    %c0_i32_0 = arith.constant 0 : i32
    %c0_i32_1 = arith.constant 0 : i32
    return %c0_i32, %c0_i32_0 : i32, i32
  }
  func.func @transform_3(%arg0: i32, %arg1: i32) -> (i32, i32) {
    %c0_i32 = arith.constant 0 : i32
    %c0_i32_0 = arith.constant 0 : i32
    %c0_i32_1 = arith.constant 0 : i32
    return %c0_i32, %c0_i32_0 : i32, i32
  }
  func.func @transform_4(%arg0: i32, %arg1: i32) -> (i32, i32) {
    %c0_i32 = arith.constant 0 : i32
    %c0_i32_0 = arith.constant 0 : i32
    return %c0_i32, %arg1 : i32, i32
  }
  func.func @transform_5(%arg0: i32, %arg1: i32) -> (i32, i32) {
    %c0_i32 = arith.constant 0 : i32
    %c0_i32_0 = arith.constant 0 : i32
    return %c0_i32, %arg1 : i32, i32
  }
  func.func @transform_6(%arg0: i32, %arg1: i32) -> (i32, i32) {
    %c0_i32 = arith.constant 0 : i32
    return %arg0, %arg1 : i32, i32
  }
}

</mosaic_0001>

<bundles_post_ra>
// kernel: tpu_custom_call.1
= control target key start
LH: loop header
LB: loop body
LE: loop exit
PB: predicated region body
PF: predicated region fallthrough
CT: control target
= control target key end

     0   :  { %11 = vsyncpa [#allocation4], 0  ;;  %s494_s0 = inlined_call_operand.hbm [shape: f32[8,8,32], index: 0, kind: input, shape index: {}]   ;;  %s495_s1 = inlined_call_operand.hbm [shape: bf16[32,32], index: 1, kind: input, shape index: {}]   ;;  %s496_s2 = inlined_call_operand.vmem [shape: f32[1,32], index: 2, kind: input, shape index: {}]   ;;  %s497_s3 = inlined_call_operand.vmem [shape: f32[1,32], index: 3, kind: input, shape index: {}]   ;;  %s498_s4 = inlined_call_operand.hbm [shape: bf16[32,128], index: 4, kind: input, shape index: {}]   ;;  %s499_s5 = inlined_call_operand.vmem [shape: f32[1,128], index: 5, kind: input, shape index: {}]   ;;  %s500_s6 = inlined_call_operand.hbm [shape: f32[8,128], index: 6, kind: output, shape index: {}]  }
   0x1   :  { %12 = vsyncpa [#allocation7], 0  ;;  %s31_s23 = sshll.u32 %s495_s1, 4  ;;  %s32_s23 = int_to_ptr.hbm [resolvable:$true] %s31_s23 }
   0x2   :  { %13 = vsyncpa [#allocation5], 0  ;;  %s417_s24 = smov [#allocation6]   ;;  %s18_s28 = sshll.u32 %s494_s0, 4  ;;  %s19_s28 = int_to_ptr.hbm [resolvable:$true] %s18_s28 }
   0x3   :  { %s33_s25 = sshll.u32 %s417_s24, 4  ;;  %s418_s29 = smov 64   ;;  %s34_s25 = int_to_ptr.vmem [resolvable:$true] %s33_s25 }
   0x4   :  { %s419_s30 = smov 4   ;;  %s420_s7 = smov [#allocation3]  }
   0x5   :  { %39 = dma.hbm_to_vmem [thread:$0]  %s32_s23, 256, %s34_s25, [#allocation7], %s418_s29, %s418_s29, %s419_s30  }
   0x6   :  { %s20_s8 = sshll.u32 %s420_s7, 4  ;;  %s421_s9 = smov 128   ;;  %s21_s8 = int_to_ptr.vmem [resolvable:$true] %s20_s8 }
   0x7   :  { %s422_s10 = smov 8   ;;  %s48_s12 = sshll.u32 %s498_s4, 4  ;;  %s49_s12 = int_to_ptr.hbm [resolvable:$true] %s48_s12 }
   0x8   :  { %26 = dma.hbm_to_vmem [thread:$0]  %s19_s28, 1024, %s21_s8, [#allocation4], %s421_s9, %s421_s9, %s422_s10  }
   0x9   :  { %s423_s13 = smov [#allocation8]  }
   0xa   :  { %s50_s14 = sshll.u32 %s423_s13, 4  ;;  %s51_s14 = int_to_ptr.vmem [resolvable:$true] %s50_s14 }
   0xb   :  { %56 = dma.hbm_to_vmem [thread:$0]  %s49_s12, 256, %s51_s14, [#allocation7], %s418_s29, %s418_s29, %s419_s30  }
   0xc   :  { %411 = dma.done.wait [#allocation4], 1024  }
   0xd   :  { %412 = vsyncadd [#allocation4], 4294966272 }
   0xe   :  { %413 = dma.done.wait [#allocation7], 512  }
   0xf   :  { %414 = vsyncadd [#allocation7], 4294966784  ;;  %vm84_vm0 = vcmask 261120   ;;  %v301_v0 = vld [vmem:[#allocation6 + $0x8] sm:$0xff]  ;;  %v300_v1 = vld [vmem:[#allocation6] sm:$0xff]  ;;  %vm169_vm1 = vcmask 1041409  }
  0x10   :  { %v76_v2 = vld [vmem:[#allocation3] sm:$0xff]  ;;  %v77_v3 = vld [vmem:[#allocation3 + $0x8] sm:$0xff]  ;;  %v78_v4 = vld [vmem:[#allocation3 + $0x10] sm:$0xff]  ;;  %205 = vmatpush.bf16.msra.mxu0 %v301_v0  ;;  %vm171_vm2 = vcmask 1042434   ;;  %vm173_vm3 = vcmask 1043459   ;;  %vm175_vm4 = vcmask 1044484  }
  0x11   :  { %v79_v5 = vld [vmem:[#allocation3 + $0x18] sm:$0xff]  ;;  %v85_v6 = vsel %vm84_vm0, %v76_v2, 0.0  ;;  %v80_v7 = vld [vmem:[#allocation3 + $0x20] sm:$0xff]  ;;  %v81_v8 = vld [vmem:[#allocation3 + $0x28] sm:$0xff]  ;;  %v92_v11 = vsel %vm84_vm0, %v77_v3, 0.0  ;;  %v99_v12 = vsel %vm84_vm0, %v78_v4, 0.0 }
  0x12   :  { %v82_v9 = vld [vmem:[#allocation3 + $0x30] sm:$0xff]  ;;  %v86_v10 = vrot.slane %v85_v6, 4  ;;  %v93_v13 = vrot.slane %v92_v11, 4  ;;  %v100_v14 = vrot.slane %v99_v12, 4  ;;  %v106_v15 = vsel %vm84_vm0, %v79_v5, 0.0  ;;  %v83_v17 = vld [vmem:[#allocation3 + $0x38] sm:$0xff] }
  0x13   :  { %v113_v16 = vsel %vm84_vm0, %v80_v7, 0.0  ;;  %v107_v19 = vrot.slane %v106_v15, 4  ;;  %v120_v21 = vsel %vm84_vm0, %v81_v8, 0.0  ;;  %v127_v25 = vsel %vm84_vm0, %v82_v9, 0.0 }
  0x14   :  { %v87_v18 = vadd.f32 %v86_v10, %v85_v6  ;;  %v114_v20 = vrot.slane %v113_v16, 4  ;;  %v94_v22 = vadd.f32 %v93_v13, %v92_v11  ;;  %v101_v23 = vadd.f32 %v100_v14, %v99_v12  ;;  %206 = vmatpush.bf16.msra.mxu0 %v300_v1 }
  0x15   :  { %v121_v24 = vrot.slane %v120_v21, 4  ;;  %v108_v27 = vadd.f32 %v107_v19, %v106_v15  ;;  %v128_v29 = vrot.slane %v127_v25, 4  ;;  %v134_v33 = vsel %vm84_vm0, %v83_v17, 0.0 }
  0x16   :  { %v88_v26 = vrot.slane %v87_v18, 2  ;;  %v115_v28 = vadd.f32 %v114_v20, %v113_v16  ;;  %v95_v30 = vrot.slane %v94_v22, 2  ;;  %v102_v31 = vrot.slane %v101_v23, 2 }
  0x17   :  { %v122_v32 = vadd.f32 %v121_v24, %v120_v21  ;;  %v109_v35 = vrot.slane %v108_v27, 2  ;;  %v129_v37 = vadd.f32 %v128_v29, %v127_v25  ;;  %v135_v41 = vrot.slane %v134_v33, 4  ;;  %v313_v29 = vld [vmem:[%s497_s3] ss:$0 sm:$0xff]  ;;  %s271_s3 = sshll.u32 %s500_s6, 4  ;;  %s272_s3 = int_to_ptr.hbm [resolvable:$true] %s271_s3 }
  0x18   :  { %v89_v34 = vadd.f32 %v88_v26, %v87_v18  ;;  %v116_v36 = vrot.slane %v115_v28, 2  ;;  %v96_v38 = vadd.f32 %v95_v30, %v94_v22  ;;  %v103_v39 = vadd.f32 %v102_v31, %v101_v23  ;;  %v303_v26 = vld [vmem:[#allocation8 + $0x8] sm:$0xff] }
  0x19   :  { %v123_v40 = vrot.slane %v122_v32, 2  ;;  %v110_v43 = vadd.f32 %v109_v35, %v108_v27  ;;  %v130_v45 = vrot.slane %v129_v37, 2  ;;  %v136_v49 = vadd.f32 %v135_v41, %v134_v33  ;;  %256 = vmatpush.bf16.msra.mxu1 %v303_v26  ;;  %v302_v27 = vld [vmem:[#allocation8] sm:$0xff] }
  0x1a   :  { %v90_v42 = vrot.slane %v89_v34, 1  ;;  %v117_v44 = vadd.f32 %v116_v36, %v115_v28  ;;  %v97_v46 = vrot.slane %v96_v38, 1  ;;  %v104_v47 = vrot.slane %v103_v39, 1  ;;  %v312_v28 = vld [vmem:[%s496_s2] ss:$0 sm:$0xff]  ;;  %s424_s2 = smov [#allocation9]  }
  0x1b   :  { %v124_v48 = vadd.f32 %v123_v40, %v122_v32  ;;  %v111_v51 = vrot.slane %v110_v43, 1  ;;  %v131_v53 = vadd.f32 %v130_v45, %v129_v37  ;;  %v137_v57 = vrot.slane %v136_v49, 2  ;;  %v314_v37 = vld [vmem:[%s499_s5] ss:$0 sm:$0xff]  ;;  %s269_s19 = sshll.u32 %s424_s2, 4  ;;  %s270_s19 = int_to_ptr.vmem [resolvable:$true] %s269_s19 }
  0x1c   :  { %v91_v50 = vadd.f32 %v90_v42, %v89_v34  ;;  %v118_v52 = vrot.slane %v117_v44, 1  ;;  %v98_v54 = vadd.f32 %v97_v46, %v96_v38  ;;  %v105_v55 = vadd.f32 %v104_v47, %v103_v39 }
  0x1d   :  { %v125_v56 = vrot.slane %v124_v48, 1  ;;  %v112_v58 = vadd.f32 %v111_v51, %v110_v43  ;;  %v132_v60 = vrot.slane %v131_v53, 1  ;;  %v138_v63 = vadd.f32 %v137_v57, %v136_v49  ;;  %257 = vmatpush.bf16.msra.mxu1 %v302_v27 }
  0x1e   :  { %v119_v59 = vadd.f32 %v118_v52, %v117_v44  ;;  %v141_v61 = vpack.c.bf16 %v91_v50, %v91_v50  ;;  %v142_v0 = vpack.c.bf16 %v98_v54, %v98_v54  ;;  %v143_v1 = vpack.c.bf16 %v105_v55, %v105_v55 }
  0x1f   :  { %v126_v62 = vadd.f32 %v125_v56, %v124_v48  ;;  %v133_v2 = vadd.f32 %v132_v60, %v131_v53  ;;  %v144_v3 = vpack.c.bf16 %v112_v58, %v112_v58  ;;  %v139_v6 = vrot.slane %v138_v63, 1 }
  0x20   :  { %v145_v4 = vpack.c.bf16 %v119_v59, %v119_v59  ;;  %v161_v5 = vunpack.c.l.b16 %v141_v61  ;;  %v162_v8 = vunpack.c.l.b16 %v142_v0  ;;  %v163_v9 = vunpack.c.l.b16 %v143_v1 }
  0x21   :  { %v146_v7 = vpack.c.bf16 %v126_v62, %v126_v62  ;;  %v147_v10 = vpack.c.bf16 %v133_v2, %v133_v2  ;;  %v164_v11 = vunpack.c.l.b16 %v144_v3  ;;  %v140_v13 = vadd.f32 %v139_v6, %v138_v63 }
  0x22   :  { %v165_v12 = vunpack.c.l.b16 %v145_v4  ;;  %v170_v15 = vsel %vm169_vm1, %v162_v8, %v161_v5  ;;  %vm177_vm5 = vcmask 1045509   ;;  %vm179_vm6 = vcmask 1046534  }
  0x23   :  { %v166_v14 = vunpack.c.l.b16 %v146_v7  ;;  %v167_v16 = vunpack.c.l.b16 %v147_v10  ;;  %v172_v17 = vsel %vm171_vm2, %v163_v9, %v170_v15  ;;  %v148_v18 = vpack.c.bf16 %v140_v13, %v140_v13 }
  0x24   :  { %v174_v19 = vsel %vm173_vm3, %v164_v11, %v172_v17  ;;  %vm181_vm7 = vcmask 1047559  }
  0x25   :  { %v176_v20 = vsel %vm175_vm4, %v165_v12, %v174_v19  ;;  %v168_v21 = vunpack.c.l.b16 %v148_v18 }
  0x26   :  { %v178_v22 = vsel %vm177_vm5, %v166_v14, %v176_v20 }
  0x27   :  { %v180_v23 = vsel %vm179_vm6, %v167_v16, %v178_v22 }
  0x28   :  { %v182_v24 = vsel %vm181_vm7, %v168_v21, %v180_v23 }
  0x29   :  { %v183_v25 = vpack.c.b16 %v182_v24, %v182_v24 }
  0x2b   :  { %290 = vmatmul.msk.bf16.vlgmr.msra.gmra.mxu0 %vm84_vm0, %v183_v25 }
  0xa8   :  { %v208_v30 = vpop.f32.mrf.mxu0 }
  0xa9   :  { %v216_v31 = vmul.f32 %v312_v28, %v208_v30 }
  0xab   :  { %v221_v32 = vadd.f32 %v313_v29, %v216_v31 }
  0xad   :  { %v222_v33 = vmax.f32 %v221_v32, 0.0 }
  0xaf   :  { %223 = vst.msk [vmem:[#allocation2] sm:$0xff] %vm84_vm0, %v222_v33 }
  0xb0   :  { %v210_v34 = vpop.f32.mrf.mxu0 }
  0xb6   :  { %v224_v35 = vld [vmem:[#allocation2] sm:$0xff] }
  0xb7   :  { %v225_v36 = vpack.c.bf16 %v224_v35, %v224_v35 }
  0xb9   :  { %299 = vmatmul.msk.bf16.vlgmr.msra.gmra.mxu1 %vm84_vm0, %v225_v36 }
 0x136   :  { %v259_v38 = vpop.f32.mrf.mxu1 }
 0x137   :  { %v260_v39 = vadd.f32 %v314_v37, %v259_v38 }
 0x139   :  { %263 = vst [vmem:[#allocation9] sm:$0xff] %v260_v39 }
 0x13a   :  { %274 = dma.vmem_to_hbm [thread:$0]  %s270_s19, 128, %s272_s3, [#allocation5]  }
 0x13e   :  { %v261_v40 = vpop.f32.mrf.mxu1 }
 0x13f   :  { %415 = dma.done.wait [#allocation5], 128  }
 0x140   :  { %416 = vsyncadd [#allocation5], 4294967168 }
 0x141   :  { %279 = vsyncpa [#allocation4], 1 }
 0x142   :  { %280 = vsyncpa [#allocation7], 1 }
 0x143   :  { %281 = vsyncpa [#allocation5], 1 }

</bundles_post_ra>
